<compile_context>
chip_gen: v7x
topology: tpu7x:2x2x1
jax: 0.10.0
libtpu: 0.0.40
codegen_flags: <defaults>
</compile_context>

<pallas_src>
import functools
from typing import NamedTuple

import jax
import jax.numpy as jnp
from jax.experimental import pallas as pl

LOG_SIG_MAX = 2.0
LOG_SIG_MIN = -20.0


# --------------------------------------------------------------------------
# Parameter packing: one lane-dense [K, L] f32 slab (L >= 128).
# Row offsets are static Python ints so in-kernel slices are free.
# --------------------------------------------------------------------------
def _round_up8(n):
    return ((n + 7) // 8) * 8


def _lane_width(hidden_dim, num_actions):
    need = max(128, 4 * hidden_dim, 2 * num_actions)
    return ((need + 127) // 128) * 128


def _row_offsets(num_inputs, hidden_dim):
    offs = {}
    r = 0
    offs["w1"] = r
    r += _round_up8(num_inputs)
    offs["wg"] = r
    r += _round_up8(2 * hidden_dim)
    offs["whead"] = r
    r += _round_up8(hidden_dim)
    offs["bias"] = r          # row 0: b1, row 1: gate biases, row 2: head bias
    r += 8
    return offs, r


class PackedPolicyParams(NamedTuple):
    slab: jax.Array
    num_inputs: int
    num_actions: int
    hidden_dim: int


def pack_params(params, num_inputs, num_actions, hidden_dim):
    """Pack every weight/bias into a single lane-dense [K, L] f32 slab."""
    IN, A, H = num_inputs, num_actions, hidden_dim
    L = _lane_width(H, A)
    offs, K = _row_offsets(IN, H)

    def lane_pad(w):
        w = jnp.asarray(w, jnp.float32)
        return jnp.pad(w, ((0, 0), (0, L - w.shape[1])))

    def block(w, rows):
        w = lane_pad(w)
        return jnp.pad(w, ((0, rows - w.shape[0]), (0, 0)))

    wih = jnp.asarray(params["wih"], jnp.float32)   # [H, 3H], col blocks r|z|n
    whh = jnp.asarray(params["whh"], jnp.float32)   # [H, 3H]
    bih = jnp.asarray(params["bih"], jnp.float32)   # [1, 3H]
    bhh = jnp.asarray(params["bhh"], jnp.float32)   # [1, 3H]

    zero_hh = jnp.zeros((H, H), jnp.float32)
    # Fused gate RHS: rows 0:H act on x, rows H:2H act on h.
    # Column groups: [r_pre | z_pre | i_n (h-rows zeroed) | h_n (x-rows zeroed)]
    wg_x = jnp.concatenate(
        [wih[:, 0:H], wih[:, H:2 * H], wih[:, 2 * H:3 * H], zero_hh], axis=1)
    wg_h = jnp.concatenate(
        [whh[:, 0:H], whh[:, H:2 * H], zero_hh, whh[:, 2 * H:3 * H]], axis=1)
    wg = jnp.concatenate([wg_x, wg_h], axis=0)       # [2H, 4H]

    b_gates = jnp.concatenate([
        bih[:, 0:H] + bhh[:, 0:H],                   # b_r = b_ir + b_hr
        bih[:, H:2 * H] + bhh[:, H:2 * H],           # b_z = b_iz + b_hz
        bih[:, 2 * H:3 * H],                         # b_in
        bhh[:, 2 * H:3 * H],                         # b_hn
    ], axis=1)                                       # [1, 4H]

    w_head = jnp.concatenate([params["wm"], params["wls"]], axis=1)   # [H, 2A]
    b_head = jnp.concatenate([params["bm"], params["bls"]], axis=1)   # [1, 2A]

    bias_rows = jnp.concatenate([
        lane_pad(params["b1"]),                      # row 0
        lane_pad(b_gates),                           # row 1
        lane_pad(b_head),                            # row 2
        jnp.zeros((5, L), jnp.float32),              # rows 3-7: padding
    ], axis=0)

    slab = jnp.concatenate([
        block(params["w1"], _round_up8(IN)),
        block(wg, _round_up8(2 * H)),
        block(w_head, _round_up8(H)),
        bias_rows,
    ], axis=0)
    assert slab.shape == (K, L)
    return PackedPolicyParams(slab, IN, A, H)


# --------------------------------------------------------------------------
# Kernel: whole T-step recurrence in one invocation (grid=()).
# --------------------------------------------------------------------------
def _policy_seq_kernel(T, IN, A, H, offs,
                       state_ref, h0_ref, slab_ref, head_ref, hfin_ref):
    f32 = jnp.float32
    ob = offs["bias"]

    # Weight/bias blocks: static sublane slices of the VMEM-resident slab,
    # loaded into vregs once and reused across all T steps.
    w1 = slab_ref[offs["w1"]:offs["w1"] + IN, :]            # [IN, L]
    wg = slab_ref[offs["wg"]:offs["wg"] + 2 * H, :]         # [2H, L], 4H <= L
    wh = slab_ref[offs["whead"]:offs["whead"] + H, :]       # [H, L]
    b1 = slab_ref[ob + 0:ob + 1, :]                         # [1, L]
    bg = slab_ref[ob + 1:ob + 2, :]                         # [1, L]
    bhd = slab_ref[ob + 2:ob + 3, :][:, :2 * A]             # [1, 2A]
    whd = wh[:, :2 * A]                                     # [H, 2A]

    h = h0_ref[...].astype(f32)                             # [B, H], vreg carry
    B = h.shape[0]

    # log_std clamp mask over the 2A head lanes (hoisted out of the loop).
    lane = jax.lax.broadcasted_iota(jnp.int32, (B, 2 * A), 1)
    is_log_std = lane >= A

    # Statically unrolled time loop: T is small and static, so every lane /
    # sublane offset below is static (no masked dynamic addressing).
    for t in range(T):
        # l1 + ReLU.  Lanes >= H of x_full are exactly 0 (zero-padded w1/b1).
        x_full = jnp.dot(state_ref[t], w1, preferred_element_type=f32) + b1
        x_full = jnp.maximum(x_full, 0.0)                   # [B, L]

        # Fused GRU gates (PyTorch order r, z, n): ONE MXU pass.
        xh = jnp.concatenate([x_full[:, :H], h], axis=-1)   # [B, 2H]
        g = jnp.dot(xh, wg, preferred_element_type=f32) + bg
        r = jax.nn.sigmoid(g[:, 0:H])
        z = jax.nn.sigmoid(g[:, H:2 * H])
        n = jnp.tanh(g[:, 2 * H:3 * H] + r * g[:, 3 * H:4 * H])
        h = (1.0 - z) * n + z * h                           # [B, H]

        # Fused output heads [mean | log_std]; clamp only the log_std lanes.
        head = jnp.dot(h, whd, preferred_element_type=f32) + bhd   # [B, 2A]
        head = jnp.where(is_log_std,
                         jnp.clip(head, LOG_SIG_MIN, LOG_SIG_MAX), head)
        # Pack step t into the lane-dense [B, T*2A] output block.
        head_ref[:, t * 2 * A:(t + 1) * 2 * A] = head.astype(head_ref.dtype)

    hfin_ref[...] = h.astype(hfin_ref.dtype)


# --------------------------------------------------------------------------
# Wrappers.
# --------------------------------------------------------------------------
def rnn_gaussian_policy_forward_seq(state_seq, h0, packed):
    """Runs the whole recurrence in one kernel.  state_seq: [T, B, num_inputs].
    Returns (mean_seq [T,B,A], log_std_seq [T,B,A], h_final [B,H]).
    NOTE: h0's buffer is donated onto h_final (do not reuse h0 afterwards)."""
    T, B, IN = state_seq.shape
    A, H = packed.num_actions, packed.hidden_dim
    assert IN == packed.num_inputs
    if h0 is None:                         # PyTorch GRUCell treats h=None as 0
        h0 = jnp.zeros((B, H), jnp.float32)
    offs, K = _row_offsets(IN, H)
    L = packed.slab.shape[1]

    kernel = functools.partial(_policy_seq_kernel, T, IN, A, H, offs)
    head_flat, h_final = pl.pallas_call(
        kernel,
        out_shape=(jax.ShapeDtypeStruct((B, T * 2 * A), jnp.float32),
                   jax.ShapeDtypeStruct((B, H), jnp.float32)),
        in_specs=[
            pl.BlockSpec((T, B, IN), lambda: (0, 0, 0)),
            pl.BlockSpec((B, H), lambda: (0, 0)),
            pl.BlockSpec((K, L), lambda: (0, 0)),    # weight slab: one DMA
        ],
        out_specs=(
            pl.BlockSpec((B, T * 2 * A), lambda: (0, 0)),  # lane-dense heads
            pl.BlockSpec((B, H), lambda: (0, 0)),
        ),
        input_output_aliases={1: 1},       # h0 -> h_final (in-place recurrence)
    )(state_seq.astype(jnp.float32), h0.astype(jnp.float32), packed.slab)

    # Layout plumbing outside the kernel: [B, T*2A] -> [T, B, 2A] -> split.
    head_seq = head_flat.reshape(B, T, 2 * A).transpose(1, 0, 2)
    return head_seq[..., :A], head_seq[..., A:], h_final


def rnn_gaussian_policy_forward(state, h, packed):
    """Single step; matches PyTorch forward(state, h) -> (mean, log_std, h_out).
    For rollouts over many steps prefer rnn_gaussian_policy_forward_seq so the
    weight-slab DMA and dispatch overhead are amortized across the sequence."""
    mean_seq, log_std_seq, h_out = rnn_gaussian_policy_forward_seq(
        state[None], h, packed)
    return mean_seq[0], log_std_seq[0], h_out


# --------------------------------------------------------------------------
# Init (mirrors the PyTorch module) and a pure-JAX reference.
# --------------------------------------------------------------------------
def init_params(key, num_inputs, num_actions, hidden_dim):
    """Linear: xavier_uniform weight (stored [in, out]), zero bias.
       GRUCell: PyTorch default uniform(-1/sqrt(H), 1/sqrt(H))."""
    ks = jax.random.split(key, 8)

    def xavier(k, fan_in, fan_out):
        bound = jnp.sqrt(6.0 / (fan_in + fan_out))
        return jax.random.uniform(k, (fan_in, fan_out), jnp.float32, -bound, bound)

    H = hidden_dim
    gru_bound = 1.0 / jnp.sqrt(jnp.float32(H))
    return {
        "w1": xavier(ks[0], num_inputs, H),
        "b1": jnp.zeros((1, H), jnp.float32),
        "wih": jax.random.uniform(ks[1], (H, 3 * H), jnp.float32, -gru_bound, gru_bound),
        "bih": jax.random.uniform(ks[2], (1, 3 * H), jnp.float32, -gru_bound, gru_bound),
        "whh": jax.random.uniform(ks[3], (H, 3 * H), jnp.float32, -gru_bound, gru_bound),
        "bhh": jax.random.uniform(ks[4], (1, 3 * H), jnp.float32, -gru_bound, gru_bound),
        "wm": xavier(ks[5], H, num_actions),
        "bm": jnp.zeros((1, num_actions), jnp.float32),
        "wls": xavier(ks[6], H, num_actions),
        "bls": jnp.zeros((1, num_actions), jnp.float32),
    }


def reference_forward(state, h, params):
    hi = jax.lax.Precision.HIGHEST
    H = params["w1"].shape[1]
    x = jax.nn.relu(jnp.dot(state, params["w1"], precision=hi) + params["b1"])
    gi = jnp.dot(x, params["wih"], precision=hi) + params["bih"]
    gh = jnp.dot(h, params["whh"], precision=hi) + params["bhh"]
    i_r, i_z, i_n = gi[:, :H], gi[:, H:2 * H], gi[:, 2 * H:]
    h_r, h_z, h_n = gh[:, :H], gh[:, H:2 * H], gh[:, 2 * H:]
    r = jax.nn.sigmoid(i_r + h_r)
    z = jax.nn.sigmoid(i_z + h_z)
    n = jnp.tanh(i_n + r * h_n)
    h_new = (1.0 - z) * n + z * h
    mean = jnp.dot(h_new, params["wm"], precision=hi) + params["bm"]
    log_std = jnp.clip(jnp.dot(h_new, params["wls"], precision=hi) + params["bls"],
                       LOG_SIG_MIN, LOG_SIG_MAX)
    return mean, log_std, h_new


# --------------------------------------------------------------------------
if __name__ == "__main__":
    key = jax.random.PRNGKey(0)
    k_param, k_state, k_h, k_seq, k_h2 = jax.random.split(key, 5)

    B, NUM_INPUTS, NUM_ACTIONS, HIDDEN, T = 2, 16, 8, 32, 8

    params = init_params(k_param, NUM_INPUTS, NUM_ACTIONS, HIDDEN)
    packed = pack_params(params, NUM_INPUTS, NUM_ACTIONS, HIDDEN)

    state = jax.random.normal(k_state, (B, NUM_INPUTS), jnp.float32)
    h1 = jax.random.normal(k_h, (B, HIDDEN), jnp.float32)
    state_seq = jax.random.normal(k_seq, (T, B, NUM_INPUTS), jnp.float32)
    h2 = jax.random.normal(k_h2, (B, HIDDEN), jnp.float32)

    # Pure-JAX references, computed BEFORE any pallas call that donates its
    # hidden-state buffer (input_output_aliases).
    ref_mean, ref_log_std, ref_h = reference_forward(state, h1, params)
    ref_mean0, ref_log_std0, ref_h0 = reference_forward(
        state, jnp.zeros((B, HIDDEN), jnp.float32), params)
    h_cur = h2
    ref_means, ref_log_stds = [], []
    for t in range(T):
        m_t, l_t, h_cur = reference_forward(state_seq[t], h_cur, params)
        ref_means.append(m_t)
        ref_log_stds.append(l_t)
    ref_mean_seq = jnp.stack(ref_means)
    ref_log_std_seq = jnp.stack(ref_log_stds)
    ref_h_final = h_cur
    jax.block_until_ready((ref_mean, ref_mean0, ref_mean_seq))

    tol = dict(rtol=2e-2, atol=2e-2)
    tol_seq = dict(rtol=5e-2, atol=5e-2)

    # ---- single step, explicit hidden state (h1 donated, not reused) ------
    mean, log_std, h_out = rnn_gaussian_policy_forward(state, h1, packed)
    jax.block_until_ready((mean, log_std, h_out))
    assert mean.shape == (B, NUM_ACTIONS)
    assert log_std.shape == (B, NUM_ACTIONS)
    assert h_out.shape == (B, HIDDEN)
    assert bool(jnp.all(log_std >= LOG_SIG_MIN) & jnp.all(log_std <= LOG_SIG_MAX))
    assert bool(jnp.allclose(mean, ref_mean, **tol))
    assert bool(jnp.allclose(log_std, ref_log_std, **tol))
    assert bool(jnp.allclose(h_out, ref_h, **tol))

    # ---- single step, h=None path (zeros hidden state) ---------------------
    mean0, log_std0, h_out0 = rnn_gaussian_policy_forward(state, None, packed)
    jax.block_until_ready((mean0, log_std0, h_out0))
    assert bool(jnp.allclose(mean0, ref_mean0, **tol))
    assert bool(jnp.allclose(log_std0, ref_log_std0, **tol))
    assert bool(jnp.allclose(h_out0, ref_h0, **tol))

    # ---- whole sequence inside ONE kernel invocation (h2 donated) ----------
    # T*2A == 128 here -> the head writeback is a single full-lane-width DMA.
    mean_seq, log_std_seq, h_final = rnn_gaussian_policy_forward_seq(
        state_seq, h2, packed)
    jax.block_until_ready((mean_seq, log_std_seq, h_final))
    assert mean_seq.shape == (T, B, NUM_ACTIONS)
    assert log_std_seq.shape == (T, B, NUM_ACTIONS)
    assert h_final.shape == (B, HIDDEN)
    assert bool(jnp.allclose(mean_seq, ref_mean_seq, **tol_seq))
    assert bool(jnp.allclose(log_std_seq, ref_log_std_seq, **tol_seq))
    assert bool(jnp.allclose(h_final, ref_h_final, **tol_seq))

    # TODO(synk): sample() (Normal rsample + tanh squash + log_prob and the
    # action_scale/action_bias affine) is stochastic glue around this forward
    # pass and is left to plain JAX.
    print("KERNEL_OK")
</pallas_src>

<mosaic_0001>
module attributes {stable_mosaic.version = 11 : i64} {
  func.func @_policy_seq_kernel(%arg0: memref<1x2x16xf32, #tpu.memory_space<vmem>>, %arg1: memref<2x32xf32, #tpu.memory_space<vmem>>, %arg2: memref<120x128xf32, #tpu.memory_space<vmem>>, %arg3: memref<2x16xf32, #tpu.memory_space<vmem>>, %arg4: memref<2x32xf32, #tpu.memory_space<vmem>>) attributes {dimension_semantics = [], scalar_prefetch = 0 : i64, scratch_operands = 0 : i64, tpu.core_type = #tpu.core_type<tc>} {
    %c0 = arith.constant 0 : index
    %c0_0 = arith.constant 0 : index
    %0 = vector.load %arg2[%c0, %c0_0] : memref<120x128xf32, #tpu.memory_space<vmem>>, vector<16x128xf32>
    %c16 = arith.constant 16 : index
    %c0_1 = arith.constant 0 : index
    %1 = vector.load %arg2[%c16, %c0_1] : memref<120x128xf32, #tpu.memory_space<vmem>>, vector<64x128xf32>
    %c80 = arith.constant 80 : index
    %c0_2 = arith.constant 0 : index
    %2 = vector.load %arg2[%c80, %c0_2] : memref<120x128xf32, #tpu.memory_space<vmem>>, vector<32x128xf32>
    %c112 = arith.constant 112 : index
    %c0_3 = arith.constant 0 : index
    %3 = vector.load %arg2[%c112, %c0_3] : memref<120x128xf32, #tpu.memory_space<vmem>>, vector<1x128xf32>
    %c113 = arith.constant 113 : index
    %c0_4 = arith.constant 0 : index
    %4 = vector.load %arg2[%c113, %c0_4] : memref<120x128xf32, #tpu.memory_space<vmem>>, vector<1x128xf32>
    %c114 = arith.constant 114 : index
    %c0_5 = arith.constant 0 : index
    %5 = vector.load %arg2[%c114, %c0_5] : memref<120x128xf32, #tpu.memory_space<vmem>>, vector<1x128xf32>
    %6 = vector.extract_strided_slice %5 {offsets = [0, 0], sizes = [1, 16], strides = [1, 1]} : vector<1x128xf32> to vector<1x16xf32>
    %7 = vector.extract_strided_slice %2 {offsets = [0, 0], sizes = [32, 16], strides = [1, 1]} : vector<32x128xf32> to vector<32x16xf32>
    %c0_6 = arith.constant 0 : index
    %c0_7 = arith.constant 0 : index
    %8 = vector.load %arg1[%c0_6, %c0_7] : memref<2x32xf32, #tpu.memory_space<vmem>>, vector<2x32xf32>
    %9 = tpu.iota {dimensions = array<i32: 1>} : vector<2x16xi32>
    %c8_i32 = arith.constant 8 : i32
    %10 = vector.broadcast %c8_i32 : i32 to vector<2x16xi32>
    %11 = arith.cmpi sge, %9, %10 : vector<2x16xi32>
    %c0_8 = arith.constant 0 : index
    %c0_9 = arith.constant 0 : index
    %c0_10 = arith.constant 0 : index
    %12 = vector.load %arg0[%c0_8, %c0_9, %c0_10] : memref<1x2x16xf32, #tpu.memory_space<vmem>>, vector<1x2x16xf32>
    %13 = vector.shape_cast %12 : vector<1x2x16xf32> to vector<2x16xf32>
    %cst = arith.constant dense<0.000000e+00> : vector<2x128xf32>
    %14 = tpu.matmul %13, %0, %cst {dimension_numbers = #tpu.dot_dimension_numbers<[1], [0], [0], [1], [0, 0, 1, 1], [], []>} : vector<2x16xf32>, vector<16x128xf32>, vector<2x128xf32> -> vector<2x128xf32>
    %15 = vector.broadcast %3 : vector<1x128xf32> to vector<2x128xf32>
    %16 = arith.addf %14, %15 : vector<2x128xf32>
    %cst_11 = arith.constant 0.000000e+00 : f32
    %17 = vector.broadcast %cst_11 : f32 to vector<2x128xf32>
    %18 = arith.maximumf %16, %17 : vector<2x128xf32>
    %19 = vector.extract_strided_slice %18 {offsets = [0, 0], sizes = [2, 32], strides = [1, 1]} : vector<2x128xf32> to vector<2x32xf32>
    %20 = tpu.concatenate %19, %8 in 1 : vector<2x32xf32>, vector<2x32xf32> -> vector<2x64xf32>
    %cst_12 = arith.constant dense<0.000000e+00> : vector<2x128xf32>
    %21 = tpu.matmul %20, %1, %cst_12 {dimension_numbers = #tpu.dot_dimension_numbers<[1], [0], [0], [1], [0, 0, 1, 1], [], []>} : vector<2x64xf32>, vector<64x128xf32>, vector<2x128xf32> -> vector<2x128xf32>
    %22 = vector.broadcast %4 : vector<1x128xf32> to vector<2x128xf32>
    %23 = arith.addf %21, %22 : vector<2x128xf32>
    %24 = vector.extract_strided_slice %23 {offsets = [0, 0], sizes = [2, 32], strides = [1, 1]} : vector<2x128xf32> to vector<2x32xf32>
    %25 = arith.negf %24 : vector<2x32xf32>
    %26 = math.exp %25 : vector<2x32xf32>
    %cst_13 = arith.constant 1.000000e+00 : f32
    %27 = vector.broadcast %cst_13 : f32 to vector<2x32xf32>
    %28 = arith.addf %27, %26 : vector<2x32xf32>
    %29 = arith.divf %27, %28 : vector<2x32xf32>
    %30 = vector.extract_strided_slice %23 {offsets = [0, 32], sizes = [2, 32], strides = [1, 1]} : vector<2x128xf32> to vector<2x32xf32>
    %31 = arith.negf %30 : vector<2x32xf32>
    %32 = math.exp %31 : vector<2x32xf32>
    %cst_14 = arith.constant 1.000000e+00 : f32
    %33 = vector.broadcast %cst_14 : f32 to vector<2x32xf32>
    %34 = arith.addf %33, %32 : vector<2x32xf32>
    %35 = arith.divf %33, %34 : vector<2x32xf32>
    %36 = vector.extract_strided_slice %23 {offsets = [0, 64], sizes = [2, 32], strides = [1, 1]} : vector<2x128xf32> to vector<2x32xf32>
    %37 = vector.extract_strided_slice %23 {offsets = [0, 96], sizes = [2, 32], strides = [1, 1]} : vector<2x128xf32> to vector<2x32xf32>
    %38 = arith.mulf %29, %37 : vector<2x32xf32>
    %39 = arith.addf %36, %38 : vector<2x32xf32>
    %40 = math.tanh %39 : vector<2x32xf32>
    %cst_15 = arith.constant 1.000000e+00 : f32
    %41 = vector.broadcast %cst_15 : f32 to vector<2x32xf32>
    %42 = arith.subf %41, %35 : vector<2x32xf32>
    %43 = arith.mulf %42, %40 : vector<2x32xf32>
    %44 = arith.mulf %35, %8 : vector<2x32xf32>
    %45 = arith.addf %43, %44 : vector<2x32xf32>
    %cst_16 = arith.constant dense<0.000000e+00> : vector<2x16xf32>
    %46 = tpu.matmul %45, %7, %cst_16 {dimension_numbers = #tpu.dot_dimension_numbers<[1], [0], [0], [1], [0, 0, 1, 1], [], []>} : vector<2x32xf32>, vector<32x16xf32>, vector<2x16xf32> -> vector<2x16xf32>
    %47 = vector.broadcast %6 : vector<1x16xf32> to vector<2x16xf32>
    %48 = arith.addf %46, %47 : vector<2x16xf32>
    %cst_17 = arith.constant -2.000000e+01 : f32
    %cst_18 = arith.constant 2.000000e+00 : f32
    %49 = vector.broadcast %cst_17 : f32 to vector<2x16xf32>
    %50 = arith.maximumf %49, %48 : vector<2x16xf32>
    %51 = vector.broadcast %cst_18 : f32 to vector<2x16xf32>
    %52 = arith.minimumf %51, %50 : vector<2x16xf32>
    %53 = arith.select %11, %52, %48 : vector<2x16xi1>, vector<2x16xf32>
    %c0_19 = arith.constant 0 : index
    %c0_20 = arith.constant 0 : index
    %54 = vector.load %arg3[%c0_19, %c0_20] : memref<2x16xf32, #tpu.memory_space<vmem>>, vector<2x16xf32>
    tpu.vector_store %arg3[%c0_19, %c0_20], %53 {strides = array<i32>} : memref<2x16xf32, #tpu.memory_space<vmem>>, vector<2x16xf32>,
    %c0_21 = arith.constant 0 : index
    %c0_22 = arith.constant 0 : index
    %55 = vector.load %arg4[%c0_21, %c0_22] : memref<2x32xf32, #tpu.memory_space<vmem>>, vector<2x32xf32>
    tpu.vector_store %arg4[%c0_21, %c0_22], %45 {strides = array<i32>} : memref<2x32xf32, #tpu.memory_space<vmem>>, vector<2x32xf32>,
    return
  }
}

</mosaic_0001>

<bundles_post_ra>
// kernel: tpu_custom_call.1
= control target key start
LH: loop header
LB: loop body
LE: loop exit
PB: predicated region body
PF: predicated region fallthrough
CT: control target
= control target key end

     0   :  { %10 = vsyncpa [#allocation3], 0  ;;  %s676_s0 = inlined_call_operand.vmem [shape: f32[1,2,16], index: 0, kind: input, shape index: {}]   ;;  %s677_s1 = inlined_call_operand.hbm [shape: f32[2,32], index: 1, kind: input, shape index: {}, may-alias: {1,4}]   ;;  %s678_s2 = inlined_call_operand.hbm [shape: f32[120,128], index: 2, kind: input, shape index: {}]   ;;  %s679_s3 = inlined_call_operand.hbm [shape: f32[2,16], index: 3, kind: output, shape index: {0}]   ;;  %s680_s4 = inlined_call_operand.hbm [shape: f32[2,32], index: 4, kind: output, shape index: {1}, may-alias: {1,4}]  }
   0x1   :  { %11 = vsyncpa [#allocation6], 0 }
   0x2   :  { %12 = vsyncpa [#allocation4], 0 }
   0x3   :  { %13 = vsyncpa [#allocation9], 0  ;;  %s567_s15 = smov [#allocation2]   ;;  %s568_s17 = smov [#allocation5]  }
   0x4   :  { %s22_s16 = sshll.u32 %s567_s15, 4  ;;  %s31_s18 = sshll.u32 %s568_s17, 4  ;;  %s23_s16 = int_to_ptr.vmem [resolvable:$true] %s22_s16  ;;  %s604_s18 = int_to_ptr.vmem [resolvable:$true] %s31_s18 }
   0x5   :  { %s471_s21 = scalar_lea.hbm %s677_s1, 32 }
   0x6   :  { %p472_p0 = scmp.ne.s32.totalorder %s677_s1, %s471_s21  ;;  %p475_p1 = scmp.lt.u32.totalorder %s471_s21, %s677_s1 }
   0x8   :  { %p477_p2 = pnand %p475_p1, %p472_p0 }
   0xa   :  { %480 = shalt.err (!%p477_p2)
}
   0xb   :  { %s481_s26 = scalar_lea.vmem %s23_s16, 32  ;;  %p486_p4 = scmp.lt.s32.totalorder %s23_s16, %s23_s16 }
   0xc   :  { %p482_p3 = scmp.ne.s32.totalorder %s23_s16, %s481_s26  ;;  %p487_p5 = scmp.lt.s32.totalorder %s481_s26, %s481_s26 }
   0xe   :  { %p488_p6 = por %p487_p5, %p486_p4 }
  0x10   :  { %p489_p7 = pnand %p488_p6, %p482_p3 }
  0x12   :  { %492 = shalt.err (!%p489_p7)
}
  0x13   :  { %25 = dma.hbm_to_vmem [thread:$0]  %s677_s1, 32, %s23_s16, [#allocation3]  }
  0x14   :  { %s493_s5 = scalar_lea.hbm %s678_s2, 1920 }
  0x15   :  { %p494_p8 = scmp.ne.s32.totalorder %s678_s2, %s493_s5  ;;  %p497_p9 = scmp.lt.u32.totalorder %s493_s5, %s678_s2 }
  0x17   :  { %p499_p10 = pnand %p497_p9, %p494_p8 }
  0x19   :  { %502 = shalt.err (!%p499_p10)
}
  0x1a   :  { %s503_s10 = scalar_lea.vmem %s604_s18, 1920  ;;  %p508_p12 = scmp.lt.s32.totalorder %s604_s18, %s604_s18 }
  0x1b   :  { %p504_p11 = scmp.ne.s32.totalorder %s604_s18, %s503_s10  ;;  %p509_p13 = scmp.lt.s32.totalorder %s503_s10, %s503_s10 }
  0x1d   :  { %p510_p0 = por %p509_p13, %p508_p12 }
  0x1f   :  { %p511_p1 = pnand %p510_p0, %p504_p11 }
  0x21   :  { %514 = shalt.err (!%p511_p1)
}
  0x22   :  { %s569_s1 = smov 128   ;;  %s570_s11 = smov 8  }
  0x23   :  { %37 = dma.hbm_to_vmem [thread:$0]  %s678_s2, 1920, %s604_s18, [#allocation6], %s569_s1, %s569_s1, %s570_s11  }
  0x24   :  { %559 = dma.done.wait [#allocation3], 32  }
  0x25   :  { %560 = vsyncadd [#allocation3], 4294967264 }
  0x26   :  { %561 = dma.done.wait [#allocation6], 1920  }
  0x27   :  { %562 = vsyncadd [#allocation6], 4294965376  ;;  %v571_v0 = vmov 0.0|0.0   ;;  %vm572_vm0 = vmmov 0   ;;  %v573_v1 = vmov 0.0   ;;  %v44_v2 = vld [vmem:[#allocation5] sm:$0xff] }
  0x28   :  { %432 = vmatprep.subr.bf16.mxu0 %v571_v0  ;;  %399 = vmatprep.mubr.msk.f32.mxu0 %vm572_vm0, %v573_v1  ;;  %v45_v3 = vld [vmem:[#allocation5 + $0x8] sm:$0xff]  ;;  %v61_v5 = vld [vmem:[#allocation2] sm:$0x3]  ;;  %v46_v6 = vld [vmem:[#allocation5 + $0x10] sm:$0xff]  ;;  %s574_s2 = smov 32   ;;  %vm70_vm1 = vcmask 130048  }
  0x29   :  { %435 = vmatprep.subr.bf16.mxu1 %v571_v0  ;;  %418 = vmatprep.mubr.msk.f32.mxu1 %vm572_vm0, %v573_v1  ;;  %v433_v4 = vpack.c.bf16 %v45_v3, %v44_v2  ;;  %v47_v7 = vld [vmem:[#allocation5 + $0x18] sm:$0xff]  ;;  %v48_v9 = vld [vmem:[#allocation5 + $0x20] sm:$0xff]  ;;  %v49_v10 = vld [vmem:[#allocation5 + $0x28] sm:$0xff]  ;;  %vm149_vm2 = vcmask 261120   ;;  %vm155_vm3 = vcmask 523264   ;;  %s576_s16 = smov 96  }
  0x2a   :  { %146 = vrot.lane.b32.xlu0 %v61_v5, %s574_s2  ;;  %v436_v8 = vpack.c.bf16 %v47_v7, %v46_v6  ;;  %v65_v11 = vld [vmem:[%s676_s0] sm:$0x3]  ;;  %v439_v12 = vpack.c.bf16 %v49_v10, %v48_v9  ;;  %v50_v13 = vld [vmem:[#allocation5 + $0x30] sm:$0xff]  ;;  %v52_v16 = vld [vmem:[#allocation5 + $0x40] sm:$0xff]  ;;  %s575_s0 = smov 64   ;;  %vm339_vm4 = vcmask 254976  }
  0x2b   :  { %434 = vmatpush3.bf16.msra.mxu0 %v433_v4  ;;  %v51_v14 = vld [vmem:[#allocation5 + $0x38] sm:$0xff]  ;;  %v53_v17 = vld [vmem:[#allocation5 + $0x48] sm:$0xff]  ;;  %v371_v19 = vld [vmem:[#allocation5 + $0x70] ss:$0 sm:$0xff]  ;;  %s577_s17 = smov [#allocation8]  }
  0x2c   :  { %437 = vmatpush3.bf16.msra.mxu1 %v436_v8  ;;  %447 = vmatprep.subr.bf16.mxu0 %v571_v0  ;;  %v442_v15 = vpack.c.bf16 %v51_v14, %v50_v13  ;;  %v445_v18 = vpack.c.bf16 %v53_v17, %v52_v16  ;;  %v373_v26 = vld [vmem:[#allocation5 + $0x71] ss:$0 sm:$0xff]  ;;  %v55_v39 = vld [vmem:[#allocation5 + $0x58] sm:$0xff]  ;;  %v56_v40 = vld [vmem:[#allocation5 + $0x60] sm:$0xff]  ;;  %s357_s18 = sshll.u32 %s577_s17, 4  ;;  %s358_s18 = int_to_ptr.vmem [resolvable:$true] %s357_s18 }
  0x2d   :  { %438 = vmatprep.subr.bf16.mxu1 %v571_v0  ;;  %v54_v38 = vld [vmem:[#allocation5 + $0x50] sm:$0xff]  ;;  %v57_v42 = vld [vmem:[#allocation5 + $0x68] sm:$0xff]  ;;  %s515_s19 = scalar_lea.vmem %s358_s18, 32  ;;  %p520_p3 = scmp.lt.s32.totalorder %s358_s18, %s358_s18 }
  0x2e   :  { %400 = vmatmul.mubr.msk.f32.vlgmr.msra.gmra.mrb[0].mxu0 %vm70_vm1, %v65_v11  ;;  %v448_v41 = vpack.c.bf16 %v55_v39, %v54_v38  ;;  %v451_v43 = vpack.c.bf16 %v57_v42, %v56_v40  ;;  %p516_p2 = scmp.ne.s32.totalorder %s358_s18, %s515_s19  ;;  %p521_p4 = scmp.lt.s32.totalorder %s515_s19, %s515_s19 }
  0x2f   :  { %429 = vmatprep.mubr.msk.f32.mxu0 %vm572_vm0, %v573_v1 }
  0x30   :  { %440 = vmatpush3.bf16.msra.mxu1 %v439_v12  ;;  %449 = vmatpush3.bf16.msra.mxu0 %v448_v41  ;;  %p522_p5 = por %p521_p4, %p520_p3 }
  0x31   :  { %441 = vmatprep.subr.bf16.mxu1 %v571_v0  ;;  %450 = vmatprep.subr.bf16.mxu0 %v571_v0 }
  0x32   :  { %p523_p6 = pnand %p522_p5, %p516_p2 }
  0x34   :  { %443 = vmatpush3.bf16.msra.mxu1 %v442_v15  ;;  %452 = vmatpush3.bf16.msra.mxu0 %v451_v43 }
  0x35   :  { %444 = vmatprep.subr.bf16.mxu1 %v571_v0 }
  0x38   :  { %446 = vmatpush3.bf16.msra.mxu1 %v445_v18 }
  0x9c   :  { %v147_v23 = vpop.permute.xlu0 %146 }
 0x101   :  { %v140_v20 = vpop.f32.mrb[0].mxu0 }
 0x102   :  { %v141_v21 = vadd.f32 %v371_v19, %v140_v20  ;;  %v401_v22 = vpop.f32.mrb[1].mxu0 }
 0x104   :  { %v144_v24 = vmax.f32 %v141_v21, 0.0 }
 0x106   :  { %v150_v25 = vsel %vm149_vm2, %v144_v24, %v147_v23 }
 0x107   :  { %419 = vmatmul.mubr.msk.f32.vlgmr.msra.gmra.mrb[0].mxu1 %vm155_vm3, %v150_v25 }
 0x1da   :  { %v225_v27 = vpop.f32.mrb[0].mxu1 }
 0x1db   :  { %v226_v28 = vadd.f32 %v373_v26, %v225_v27  ;;  %v420_v29 = vpop.f32.mrb[1].mxu1 }
 0x1dd   :  { %236 = vrot.lane.b32.xlu0 %v226_v28, %s574_s2  ;;  %v375_v30 = vmul.f32 -1.442695, %v226_v28 }
 0x1df   :  { %465 = vpow2.f32 %v375_v30 }
 0x1e9   :  { %v466_v31 = vpop.eup %465 }
 0x1ea   :  { %v232_v32 = vadd.f32 1.0, %v466_v31 }
 0x1ec   :  { %467 = vrcp.f32 %v232_v32 }
 0x1f6   :  { %v468_v33 = vpop.eup %467 }
 0x1f7   :  { %v246_v45 = vsub.f32 1.0, %v468_v33  ;;  %v252_v47 = vmul.f32 %v468_v33, %v147_v23 }
 0x24f   :  { %v237_v34 = vpop.permute.xlu0 %236 }
 0x250   :  { %v239_v35 = vmul.f32 %v468_v33, %v237_v34 }
 0x252   :  { %241 = vrot.lane.b32.xlu1 %v239_v35, %s575_s0 }
 0x2c4   :  { %v242_v36 = vpop.permute.xlu1 %241 }
 0x2c5   :  { %v244_v37 = vadd.f32 %v242_v36, %v226_v28 }
 0x2c7   :  { %469 = vtanh.f32 %v244_v37 }
 0x2d1   :  { %v470_v44 = vpop.eup %469 }
 0x2d2   :  { %248 = vrot.lane.b32.xlu1 %v470_v44, %s576_s16 }
 0x344   :  { %v249_v46 = vpop.permute.xlu1 %248 }
 0x345   :  { %v251_v48 = vmul.f32 %v249_v46, %v246_v45 }
 0x347   :  { %v253_v49 = vadd.f32 %v252_v47, %v251_v48 }
 0x349   :  { %259 = vrot.lane.b32.xlu0 %v253_v49, %s576_s16 }
 0x3bb   :  { %v260_v50 = vpop.permute.xlu0 %259 }
 0x3bc   :  { %430 = vmatmul.mubr.msk.f32.vlgmr.msra.gmra.mrb[2].mxu0 %vm149_vm2, %v260_v50  ;;  %340 = vst.msk [vmem:[#allocation8] sm:$0x3] %vm339_vm4, %v260_v50 }
 0x3bd   :  { %526 = shalt.err (!%p523_p6)
}
 0x3be   :  { %s527_s22 = scalar_lea.hbm %s680_s4, 32 }
 0x3bf   :  { %p528_p7 = scmp.ne.s32.totalorder %s680_s4, %s527_s22  ;;  %p531_p8 = scmp.lt.u32.totalorder %s527_s22, %s680_s4 }
 0x3c1   :  { %p533_p9 = pnand %p531_p8, %p528_p7 }
 0x3c3   :  { %536 = shalt.err (!%p533_p9)
}
 0x3c4   :  { %360 = dma.vmem_to_hbm [thread:$0]  %s358_s18, 32, %s680_s4, [#allocation9]   ;;  %v62_v51 = vlaneseq  ;;  %v376_v52 = vld [vmem:[#allocation5 + $0x72] ss:$0 sm:$0xff]  ;;  %vm336_vm6 = vcmask 123904  }
 0x3c5   :  { %s578_s29 = smov [#allocation7]  }
 0x3c6   :  { %v63_v54 = vand.u32 127, %v62_v51  ;;  %s347_s30 = sshll.u32 %s578_s29, 4  ;;  %s348_s30 = int_to_ptr.vmem [resolvable:$true] %s347_s30 }
 0x3c7   :  { %s537_s5 = scalar_lea.vmem %s348_s30, 32  ;;  %p542_p11 = scmp.lt.s32.totalorder %s348_s30, %s348_s30 }
 0x3c8   :  { %vm64_vm5 = vcmp.ge.s32.totalorder %v63_v54, 8  ;;  %p538_p10 = scmp.ne.s32.totalorder %s348_s30, %s537_s5  ;;  %p543_p12 = scmp.lt.s32.totalorder %s537_s5, %s537_s5 }
 0x3ca   :  { %p544_p13 = por %p543_p12, %p542_p11 }
 0x3cc   :  { %p545_p0 = pnand %p544_p13, %p538_p10 }
 0x48f   :  { %v329_v53 = vpop.f32.mrb[2].mxu0 }
 0x490   :  { %v330_v55 = vadd.f32 %v376_v52, %v329_v53  ;;  %v431_v56 = vpop.f32.mrb[3].mxu0 }
 0x492   :  { %v333_v57 = vmax.f32 %v330_v55, -20.0 }
 0x494   :  { %v334_v58 = vmin.f32 %v333_v57, 2.0 }
 0x496   :  { %v335_v59 = vsel %vm64_vm5, %v334_v58, %v330_v55 }
 0x497   :  { %337 = vst.msk [vmem:[#allocation7] sm:$0x3] %vm336_vm6, %v335_v59 }
 0x498   :  { %548 = shalt.err (!%p545_p0)
}
 0x499   :  { %s549_s7 = scalar_lea.hbm %s679_s3, 32 }
 0x49a   :  { %p550_p1 = scmp.ne.s32.totalorder %s679_s3, %s549_s7  ;;  %p553_p2 = scmp.lt.u32.totalorder %s549_s7, %s679_s3 }
 0x49c   :  { %p555_p3 = pnand %p553_p2, %p550_p1 }
 0x49e   :  { %558 = shalt.err (!%p555_p3)
}
 0x49f   :  { %350 = dma.vmem_to_hbm [thread:$0]  %s348_s30, 32, %s679_s3, [#allocation4]  }
 0x4a0   :  { %563 = dma.done.wait [#allocation4], 32  }
 0x4a1   :  { %564 = vsyncadd [#allocation4], 4294967264 }
 0x4a2   :  { %565 = dma.done.wait [#allocation9], 32  }
 0x4a3   :  { %566 = vsyncadd [#allocation9], 4294967264 }
 0x4a4   :  { %367 = vsyncpa [#allocation3], 1 }
 0x4a5   :  { %368 = vsyncpa [#allocation6], 1 }
 0x4a6   :  { %369 = vsyncpa [#allocation4], 1 }
 0x4a7   :  { %370 = vsyncpa [#allocation9], 1 }

</bundles_post_ra>
